<compile_context>
chip_gen: v7x
topology: tpu7x:2x2x1
jax: 0.10.0
libtpu: 0.0.40
codegen_flags: <defaults>
</compile_context>

<pallas_src>
import functools

import jax
import jax.numpy as jnp
from jax.experimental import pallas as pl
from jax.experimental.pallas import tpu as pltpu


def llc_kernel(x_ref, a_ref, bl_ref, o_ref, *, ns, epi):
    # ns / epi are Python floats -> literals in the kernel.
    x = x_ref[...].astype(jnp.float32)                    # (tb, tn)
    a = a_ref[...]                                        # (1, tn) f32
    bl = bl_ref[...]                                      # (1, tn) f32
    a_eff = -(jnp.maximum(jnp.abs(a) - epi, 0.0) + epi)   # "clamp" a <= -epi
    b = bl * bl + 0.5
    t = a_eff * jnp.abs(x) + b
    y = jnp.maximum(t, ns * t)                            # leaky_relu(t)
    out = jnp.minimum(y, ns * y + (1.0 - ns))             # 1 - leaky_relu(1 - y)
    o_ref[...] = out.astype(o_ref.dtype)


def _rdown(v, m):
    return (v // m) * m


def _rup(v, m):
    return ((v + m - 1) // m) * m


def _tpu_config():
    """Returns (target_tile_bytes, vmem_limit_bytes, want_two_grid_steps)."""
    try:
        vmem = int(pltpu.get_tpu_info().vmem_capacity_bytes)
    except Exception:
        vmem = 64 * 1024 * 1024            # be conservative (v7x-sized VMEM)
    if vmem <= 64 * 1024 * 1024:
        # v7x: 64 MiB VMEM per TC, 2 TensorCores -> modest tiles, ensure the
        # "parallel" grid never collapses to a single step.
        return 4 * 1024 * 1024, 48 * 1024 * 1024, True
    # v5e / v6e: 128 MiB VMEM, single TensorCore -> larger tiles are free.
    return 8 * 1024 * 1024, 64 * 1024 * 1024, False


def llc_forward(x, a, b_like, *, negative_slope=0.01, epi=1e-08,
                min_pallas_bytes=1 << 20):
    """x: (B, N); a, b_like: (N,) float32 parameters."""
    B, N = x.shape
    ns = float(negative_slope)
    ep = float(abs(epi))
    out_dtype = x.dtype

    # Sub-MiB problems: pallas_call launch/pipeline overhead dominates, a fused
    # XLA elementwise op is strictly faster.
    if x.size * x.dtype.itemsize < min_pallas_bytes:
        return llc_reference(x, a, b_like, negative_slope=ns, epi=ep).astype(out_dtype)

    target_tile_bytes, vmem_limit, want_two_steps = _tpu_config()
    target_elems = max(8 * 128, target_tile_bytes // 4)    # budget in f32 elements

    Bp, Np = _rup(B, 8), _rup(N, 128)

    # Feature tile first (lane-dense stores, contiguous DMA when tn == Np),
    # then row tile to fill the per-block byte budget.
    tn = min(Np, max(128, _rdown(target_elems // 8, 128)))
    tb = min(Bp, max(8, _rdown(target_elems // tn, 8)))

    # v7x has two TensorCores: make sure there are >= 2 grid steps to shard.
    if want_two_steps and pl.cdiv(Bp, tb) * pl.cdiv(Np, tn) < 2:
        if Bp >= 16:
            tb = max(8, _rup(pl.cdiv(Bp, 2), 8))
        elif Np >= 256:
            tn = max(128, _rup(pl.cdiv(Np, 2), 128))

    # Pad to exact tile multiples so the grid divides evenly (no edge masking),
    # then slice the valid region back out. No-op for aligned shapes.
    Bpad, Npad = _rup(B, tb), _rup(N, tn)
    if (Bpad, Npad) != (B, N):
        x = jnp.pad(x, ((0, Bpad - B), (0, Npad - N)))
    if Npad != N:
        a = jnp.pad(a, (0, Npad - N))
        b_like = jnp.pad(b_like, (0, Npad - N))
    a2 = a.reshape(1, Npad).astype(jnp.float32)
    bl2 = b_like.reshape(1, Npad).astype(jnp.float32)

    grid = (Bpad // tb, Npad // tn)
    kernel = functools.partial(llc_kernel, ns=ns, epi=ep)

    out = pl.pallas_call(
        kernel,
        out_shape=jax.ShapeDtypeStruct((Bpad, Npad), out_dtype),
        grid_spec=pltpu.PrefetchScalarGridSpec(
            num_scalar_prefetch=0,
            grid=grid,
            in_specs=[
                pl.BlockSpec((tb, tn), lambda i, j: (i, j)),   # x (native dtype)
                pl.BlockSpec((1, tn), lambda i, j: (0, j)),    # a      (broadcast)
                pl.BlockSpec((1, tn), lambda i, j: (0, j)),    # b_like (broadcast)
            ],
            out_specs=pl.BlockSpec((tb, tn), lambda i, j: (i, j)),
        ),
        compiler_params=pltpu.CompilerParams(
            dimension_semantics=("parallel", "parallel"),
            vmem_limit_bytes=vmem_limit,
        ),
        cost_estimate=pl.CostEstimate(
            flops=10 * Bpad * Npad,
            transcendentals=0,
            bytes_accessed=(Bpad * Npad * (x.dtype.itemsize + jnp.dtype(out_dtype).itemsize)
                            + 2 * Npad * 4),
        ),
    )(x, a2, bl2)

    if (Bpad, Npad) != (B, N):
        out = out[:B, :N]
    return out


def llc_reference(x, a, b_like, *, negative_slope=0.01, epi=1e-08):
    a_eff = -(jnp.maximum(jnp.abs(a) - epi, 0.0) + epi)
    b = b_like * b_like + 0.5
    x = jnp.abs(x)
    x = a_eff * x + b
    x = jnp.where(x >= 0, x, negative_slope * x)
    y = 1.0 - x
    y = jnp.where(y >= 0, y, negative_slope * y)
    return 1.0 - y


if __name__ == "__main__":
    # Module hyperparameters (match PyTorch __init__ defaults).
    size = 128
    batch = 16
    a_init = -1.0
    b_init = 2.0
    negative_slope = 0.01
    epi = 1e-08

    # Deterministic parameter init (as in LLC.__init__).
    a = jnp.full((size,), a_init, dtype=jnp.float32)
    b_like = jnp.full((size,), jnp.sqrt(b_init - 0.5), dtype=jnp.float32)

    # Deterministic input.
    key = jax.random.PRNGKey(0)
    x = jax.random.normal(key, (batch, size), dtype=jnp.float32) * 3.0

    # min_pallas_bytes=0 forces the Pallas path even at this demo size
    # (the default would route sub-MiB inputs to the fused XLA fallback).
    out = llc_forward(x, a, b_like, negative_slope=negative_slope, epi=epi,
                      min_pallas_bytes=0)
    out = jax.block_until_ready(out)

    ref = llc_reference(x, a, b_like, negative_slope=negative_slope, epi=epi)
    assert out.shape == (batch, size)
    assert out.dtype == x.dtype
    assert jnp.allclose(out, ref, atol=1e-5, rtol=1e-5)

    print("KERNEL_OK")
</pallas_src>

<mosaic_0001>
module attributes {stable_mosaic.version = 11 : i64} {
  func.func @llc_kernel(%arg0: i32, %arg1: i32, %arg2: memref<8x128xf32, #tpu.memory_space<vmem>>, %arg3: memref<1x128xf32, #tpu.memory_space<vmem>>, %arg4: memref<1x128xf32, #tpu.memory_space<vmem>>, %arg5: memref<8x128xf32, #tpu.memory_space<vmem>>) attributes {dimension_semantics = [#tpu.dimension_semantics<parallel>, #tpu.dimension_semantics<parallel>], iteration_bounds = array<i64: 2, 1>, scalar_prefetch = 0 : i64, scratch_operands = 0 : i64, tpu.core_type = #tpu.core_type<tc>, window_params = [{transform_indices = @transform_0, window_bounds = array<i64: 8, 128>}, {transform_indices = @transform_1, window_bounds = array<i64: 1, 128>}, {transform_indices = @transform_2, window_bounds = array<i64: 1, 128>}, {transform_indices = @transform_3, window_bounds = array<i64: 8, 128>}]} {
    %c0 = arith.constant 0 : index
    %c0_0 = arith.constant 0 : index
    %0 = vector.load %arg2[%c0, %c0_0] : memref<8x128xf32, #tpu.memory_space<vmem>>, vector<8x128xf32>
    %c0_1 = arith.constant 0 : index
    %c0_2 = arith.constant 0 : index
    %1 = vector.load %arg3[%c0_1, %c0_2] : memref<1x128xf32, #tpu.memory_space<vmem>>, vector<1x128xf32>
    %c0_3 = arith.constant 0 : index
    %c0_4 = arith.constant 0 : index
    %2 = vector.load %arg4[%c0_3, %c0_4] : memref<1x128xf32, #tpu.memory_space<vmem>>, vector<1x128xf32>
    %3 = math.absf %1 : vector<1x128xf32>
    %cst = arith.constant 9.99999993E-9 : f32
    %4 = vector.broadcast %cst : f32 to vector<1x128xf32>
    %5 = arith.subf %3, %4 : vector<1x128xf32>
    %cst_5 = arith.constant 0.000000e+00 : f32
    %6 = vector.broadcast %cst_5 : f32 to vector<1x128xf32>
    %7 = arith.maximumf %5, %6 : vector<1x128xf32>
    %cst_6 = arith.constant 9.99999993E-9 : f32
    %8 = vector.broadcast %cst_6 : f32 to vector<1x128xf32>
    %9 = arith.addf %7, %8 : vector<1x128xf32>
    %cst_7 = arith.constant 0.000000e+00 : f32
    %10 = vector.broadcast %cst_7 : f32 to vector<1x128xf32>
    %11 = arith.subf %10, %9 : vector<1x128xf32>
    %12 = arith.mulf %2, %2 : vector<1x128xf32>
    %cst_8 = arith.constant 5.000000e-01 : f32
    %13 = vector.broadcast %cst_8 : f32 to vector<1x128xf32>
    %14 = arith.addf %12, %13 : vector<1x128xf32>
    %15 = math.absf %0 : vector<8x128xf32>
    %16 = vector.broadcast %11 : vector<1x128xf32> to vector<8x128xf32>
    %17 = arith.mulf %16, %15 : vector<8x128xf32>
    %18 = vector.broadcast %14 : vector<1x128xf32> to vector<8x128xf32>
    %19 = arith.addf %17, %18 : vector<8x128xf32>
    %cst_9 = arith.constant 0.00999999977 : f32
    %20 = vector.broadcast %cst_9 : f32 to vector<8x128xf32>
    %21 = arith.mulf %20, %19 : vector<8x128xf32>
    %22 = arith.maximumf %19, %21 : vector<8x128xf32>
    %cst_10 = arith.constant 0.00999999977 : f32
    %23 = vector.broadcast %cst_10 : f32 to vector<8x128xf32>
    %24 = arith.mulf %23, %22 : vector<8x128xf32>
    %cst_11 = arith.constant 9.900000e-01 : f32
    %25 = vector.broadcast %cst_11 : f32 to vector<8x128xf32>
    %26 = arith.addf %24, %25 : vector<8x128xf32>
    %27 = arith.minimumf %22, %26 : vector<8x128xf32>
    %c0_12 = arith.constant 0 : index
    %c0_13 = arith.constant 0 : index
    %28 = vector.load %arg5[%c0_12, %c0_13] : memref<8x128xf32, #tpu.memory_space<vmem>>, vector<8x128xf32>
    tpu.vector_store %arg5[%c0_12, %c0_13], %27 {strides = array<i32>} : memref<8x128xf32, #tpu.memory_space<vmem>>, vector<8x128xf32>,
    return
  }
  func.func @transform_0(%arg0: i32, %arg1: i32) -> (i32, i32) {
    %c0_i32 = arith.constant 0 : i32
    return %arg0, %arg1 : i32, i32
  }
  func.func @transform_1(%arg0: i32, %arg1: i32) -> (i32, i32) {
    %c0_i32 = arith.constant 0 : i32
    %c0_i32_0 = arith.constant 0 : i32
    return %c0_i32, %arg1 : i32, i32
  }
  func.func @transform_2(%arg0: i32, %arg1: i32) -> (i32, i32) {
    %c0_i32 = arith.constant 0 : i32
    %c0_i32_0 = arith.constant 0 : i32
    return %c0_i32, %arg1 : i32, i32
  }
  func.func @transform_3(%arg0: i32, %arg1: i32) -> (i32, i32) {
    %c0_i32 = arith.constant 0 : i32
    return %arg0, %arg1 : i32, i32
  }
}

</mosaic_0001>

<bundles_post_ra>
// kernel: tpu_custom_call.1
= control target key start
LH: loop header
LB: loop body
LE: loop exit
PB: predicated region body
PF: predicated region fallthrough
CT: control target
= control target key end

     0   :  { %8 = vsyncpa [#allocation3], 0  ;;  %s773_s0 = inlined_call_operand.hbm [shape: f32[16,128], index: 0, kind: input, shape index: {}]   ;;  %s774_s1 = inlined_call_operand.vmem [shape: f32[1,128], index: 1, kind: input, shape index: {}]   ;;  %s775_s2 = inlined_call_operand.vmem [shape: f32[1,128], index: 2, kind: input, shape index: {}]   ;;  %s776_s3 = inlined_call_operand.hbm [shape: f32[16,128], index: 3, kind: output, shape index: {}]  }
   0x1   :  { %10 = vsyncpa [#allocation3 + $0x1], 0 }
   0x2   :  { %11 = vsyncpa [#allocation4], 0 }
   0x3   :  { %13 = vsyncpa [#allocation4 + $0x1], 0  ;;  %s595_s12 = smov 0   ;;  %s597_s13 = smov 0  }
   0x4   :  { %s599_s14 = smov 0   ;;  %s601_s15 = smov 0  }
   0x5   :  { %s603_s16 = smov 0   ;;  %s605_s17 = smov 0  }
   0x6 LB: > { %s381_s18 = sadd.s32 4294967295, %s571_s17   ;;  %s382_s19 = sadd.s32 4294967294, %s571_s17   ;;  %s571_s17 = sphi %s605_s17, %s19_s17   ;;  %s567_s16 = sphi %s603_s16, %s792_s16   ;;  %s563_s15 = sphi %s601_s15, %s791_s15   ;;  %s559_s14 = sphi %s599_s14, %s790_s14   ;;  %s555_s13 = sphi %s597_s13, %s789_s13   ;;  %s551_s12 = sphi %s595_s12, %s788_s12  }
   0x7   : > { %s31_s20 = sadd.s32 1, %s567_s16  ;;  %s40_s21 = sadd.s32 1, %s559_s14 }
   0x8   : > { %p33_p0 = scmp.ge.s32.totalorder %s31_s20, 2  ;;  %p47_p1 = scmp.ne.s32.totalorder %s559_s14, %s555_s13 }
   0x9   : > { %p48_p2 = scmp.eq.s32.totalorder %s571_s17, 0  ;;  %p53_p3 = scmp.ne.s32.totalorder %s555_s13, %s551_s12 }
   0xa   : > { %s794_s20 = smov (%p33_p0, %s31_s20), 0  ;;  %p54_p5 = scmp.eq.s32.totalorder %s381_s18, 0 }
   0xb   : > { %p636_p4 = por %p48_p2, %p47_p1  ;;  %s35_s23 = ssub.s32 %s567_s16, %s794_s20 }
   0xc   : > { %p131_p6 = scmp.eq.s32.totalorder %s381_s18, 1  ;;  %p38_p7 = scmp.eq.s32.totalorder %s35_s23, 0 }
   0xd   : > { %p642_p8 = por %p54_p5, %p53_p3  ;;  %p137_p10 = scmp.eq.s32.totalorder %s382_s19, 1 }
   0xe   : > { %p646_p9 = por %p131_p6, %p47_p1  ;;  %p409_p13 = scmp.lt.s32.totalorder %s571_s17, 2 }
   0xf   : > { %s651_s26 = scalar_select %p38_p7, %s559_s14, %s40_s21  }
  0x10   : > { %s780_s25 = scalar_select %p646_p9, 1, 0 }
  0x11   : > { %p653_p11 = por %p137_p10, %p53_p3  ;;  %s169_s28 = sand.u32 1, %s559_s14  }
  0x12   : > { %s387_s29 = sshll.u32 %s169_s28, 3  ;;  %s388_s30 = sshll.u32 %s567_s16, 7 }
  0x13   : > { %s781_s27 = scalar_select %p653_p11, 1, 0 }
  0x14   : > { %s664_s6 = scalar_lea.hbm %s773_s0, %s388_s30  ;;  %s173_s7 = scalar_lea.vmem [#allocation2], %s387_s29 }
  0x15   : > { %s181_s8 = sshll.u32 %s173_s7, 4  ;;  %p670_p0 = pnand %p409_p13, %p636_p4  ;;  %s666_s8 = int_to_ptr.vmem [resolvable:$true] %s181_s8 }
  0x16   : > { %s170_s10 = scalar_lea.sflag [#allocation3], %s169_s28  ;;  %s459_s11 = scalar_lea.hbm %s664_s6, 128 }
  0x17   : > { %p460_p3 = scmp.ne.s32.totalorder %s664_s6, %s459_s11  ;;  %p461_p5 = pneg %p670_p0 }
  0x18   : > { %s464_s21 = scalar_lea.hbm %s773_s0, 256  ;;  %p465_p4 = scmp.lt.u32.totalorder %s664_s6, %s773_s0 }
  0x19   : > { %p462_p6 = pnand %p461_p5, %p460_p3  ;;  %p466_p10 = scmp.lt.u32.totalorder %s464_s21, %s459_s11 }
  0x1a   : > { %p468_p12 = scmp.lt.u32.totalorder %s459_s11, %s664_s6 }
  0x1b   : > { %p463_p7 = pneg %p462_p6  ;;  %p467_p13 = por %p466_p10, %p465_p4 }
  0x1d   : > { %p469_p1 = por %p468_p12, %p467_p13 }
  0x1f   : > { %p470_p2 = pnand %p469_p1, %p463_p7 }
  0x21   : > { %473 = shalt.err (!%p470_p2)
}
  0x22   : > { %s474_s28 = scalar_lea.vmem %s666_s8, 128  ;;  %s573_s29 = smov [#allocation2]  }
  0x23   : > { %p475_p3 = scmp.ne.s32.totalorder %s666_s8, %s474_s28  ;;  %s479_s30 = sshll.u32 %s573_s29, 4  ;;  %s480_s30 = int_to_ptr.vmem [resolvable:$false] %s479_s30 }
  0x24   : > { %s481_s4 = scalar_lea.vmem %s480_s30, 256  ;;  %p482_p9 = scmp.lt.s32.totalorder %s666_s8, %s480_s30 }
  0x25   : > { %p477_p6 = pnand %p475_p3, %p461_p5  ;;  %p483_p4 = scmp.lt.s32.totalorder %s481_s4, %s474_s28 }
  0x27   : > { %p478_p11 = pneg %p477_p6  ;;  %p484_p10 = por %p483_p4, %p482_p9 }
  0x29   : > { %p485_p12 = pnand %p484_p10, %p478_p11 }
  0x2b   : > { %488 = shalt.err (!%p485_p12)
}
  0x2c   : > { %404 = dma.hbm_to_vmem [thread:$0]  (!%p670_p0), %s664_s6, 128, %s666_s8, %s170_s10  }
  0x2d   : > { %p783_p1 = scmp.lt.s32.totalorder %s571_s17, 3  ;;  %p784_p2 = scmp.ge.s32.totalorder %s571_s17, 1 }
  0x2f   : > { %p187_p5 = pnand %p784_p2, %p783_p1 }
  0x30   : > { %s706_s5 = sand.u32 (!%p187_p5), 1, %s555_s13  }
  0x31   : > { %190 = sbr.rel (%p187_p5) target bundleno = 98 (0x62), region = 32  ;;  %s390_s7 = sshll.u32 (!%p187_p5), %s706_s5, 3 }
  0x32   : > { %s193_s11 = scalar_lea.sflag (!%p187_p5), [#allocation3], %s706_s5  ;;  %s196_s18 = scalar_lea.vmem (!%p187_p5), [#allocation2], %s390_s7 }
  0x38   : > { %542 = dma.done.wait (%p642_p8), %s193_s11, 128  }
  0x39   : > { %544 = vsyncadd (%p642_p8), %s193_s11, 4294967168  ;;  %v243_v0 = vlaneseq  ;;  %v232_v1 = vld [vmem:[%s774_s1] sm:$0x1]  ;;  %s224_s24 = scalar_lea.vmem [#allocation5], %s390_s7  ;;  %s394_s21 = sshll.u32 %s563_s15, 7 }
  0x3a   : > { %v233_v2 = vld [vmem:[%s775_s2] sm:$0x1]  ;;  %v234_v3 = vand.u32 2147483647, %v232_v1  ;;  %s277_s19 = sshll.u32 %s224_s24, 4  ;;  %s726_s28 = scalar_lea.hbm %s776_s3, %s394_s21  ;;  %s721_s19 = int_to_ptr.vmem [resolvable:$true] %s277_s19 }
  0x3b   : > { %v239_v5 = vmul.f32 %v233_v2, %v233_v2  ;;  %v244_v6 = vshrl.u32 %v243_v0, 7  ;;  %v231_v8 = vld [vmem:[%s196_s18] sm:$0xff]  ;;  %s263_s29 = scalar_lea.sflag [#allocation4], %s706_s5  ;;  %s489_s30 = scalar_lea.vmem %s721_s19, 128 }
  0x3c   : > { %v392_v4 = vadd.f32 -1e-08, %v234_v3  ;;  %v241_v13 = vand.u32 2147483647, %v231_v8  ;;  %p490_p8 = scmp.ne.s32.totalorder %s721_s19, %s489_s30  ;;  %p785_p9 = scmp.ne.s32.totalorder %s780_s25, 0 }
  0x3d   : > { %v240_v10 = vadd.f32 0.5, %v239_v5  ;;  %v245_v11 = vsub.s32 0, %v244_v6  ;;  %s574_s15 = smov [#allocation5]  }
  0x3e   : > { %v236_v7 = vmax.f32 %v392_v4, 0.0  ;;  %p491_p11 = pnand %p490_p8, %p785_p9  ;;  %s493_s4 = sshll.u32 %s574_s15, 4  ;;  %s494_s4 = int_to_ptr.vmem [resolvable:$false] %s493_s4 }
  0x3f   : > { %v253_v15 = vrot.slane %v240_v10, %v245_v11  ;;  %s495_s7 = scalar_lea.vmem %s494_s4, 256  ;;  %p496_p7 = scmp.lt.s32.totalorder %s721_s19, %s494_s4 }
  0x40   : > { %v237_v9 = vadd.f32 1e-08, %v236_v7  ;;  %p492_p0 = pneg %p491_p11  ;;  %p497_p13 = scmp.lt.s32.totalorder %s495_s7, %s489_s30 }
  0x42   : > { %v238_v12 = vsub.f32 0.0, %v237_v9  ;;  %p498_p3 = por %p497_p13, %p496_p7 }
  0x44   : > { %v246_v14 = vrot.slane %v238_v12, %v245_v11  ;;  %p499_p6 = pnand %p498_p3, %p492_p0 }
  0x46   : > { %v248_v16 = vmul.f32 %v246_v14, %v241_v13 }
  0x48   : > { %v255_v17 = vadd.f32 %v253_v15, %v248_v16 }
  0x4a   : > { %v256_v18 = vmul.f32 0.01, %v255_v17 }
  0x4c   : > { %v257_v19 = vmax.f32 %v255_v17, %v256_v18 }
  0x4e   : > { %v258_v20 = vmul.f32 0.01, %v257_v19 }
  0x50   : > { %v259_v21 = vadd.f32 0.99, %v258_v20 }
  0x52   : > { %v260_v22 = vmin.f32 %v257_v19, %v259_v21 }
  0x54   : > { %261 = vst [vmem:[%s224_s24] sm:$0xff] %v260_v22 }
  0x55   : > { %502 = shalt.err (!%p499_p6)
}
  0x56   : > { %s503_s5 = scalar_lea.hbm %s726_s28, 128  ;;  %s507_s6 = scalar_lea.hbm %s776_s3, 256 }
  0x57   : > { %p504_p4 = scmp.ne.s32.totalorder %s726_s28, %s503_s5  ;;  %p508_p1 = scmp.lt.u32.totalorder %s726_s28, %s776_s3 }
  0x58   : > { %p509_p2 = scmp.lt.u32.totalorder %s507_s6, %s503_s5  ;;  %p511_p8 = scmp.lt.u32.totalorder %s503_s5, %s726_s28 }
  0x59   : > { %p505_p10 = pnand %p504_p4, %p785_p9 }
  0x5a   : > { %p510_p5 = por %p509_p2, %p508_p1 }
  0x5b   : > { %p506_p12 = pneg %p505_p10 }
  0x5c   : > { %p512_p11 = por %p511_p8, %p510_p5 }
  0x5e   : > { %p513_p0 = pnand %p512_p11, %p506_p12 }
  0x60   : > { %516 = shalt.err (!%p513_p0)
}
  0x61   : > { %399 = dma.vmem_to_hbm [thread:$0]  (%p785_p9), %s721_s19, 128, %s726_s28, %s263_s29  }
  0x62 PF: > { %s289_s10 = sand.u32 1, %s551_s12   ;;  %p786_p7 = scmp.ne.s32.totalorder %s781_s27, 0 }
  0x63   : > { %p787_p13 = scmp.ge.s32.totalorder %s571_s17, 2  ;;  %s290_s24 = scalar_lea.sflag [#allocation4], %s289_s10 }
  0x65   : > { %p406_p3 = pnand %p787_p13, %p786_p7 }
  0x67   : > { %546 = dma.done.wait (!%p406_p3), %s290_s24, 128  }
  0x68   : > { %548 = vsyncadd (!%p406_p3), %s290_s24, 4294967168  ;;  %s19_s17 = sadd.s32 1, %s571_s17   ;;  %s788_s12 = smov %s555_s13 }
  0x69   : > { %p16_p6 = scmp.ge.s32.totalorder %s19_s17, 4   ;;  %s789_s13 = smov %s559_s14 }
  0x6a   : > { %s790_s14 = smov %s651_s26  ;;  %s791_s15 = smov %s567_s16 }
  0x6b   : > { %s792_s16 = smov %s794_s20  ;;  %18 = sbr.rel (!%p16_p6) target bundleno = 6 (0x6), region = 83 }
  0x72   :  { %295 = vsyncpa [#allocation3], 1 }
  0x73   :  { %297 = vsyncpa [#allocation3 + $0x1], 1 }
  0x74   :  { %298 = vsyncpa [#allocation4], 1 }
  0x75   :  { %300 = vsyncpa [#allocation4 + $0x1], 1 }

</bundles_post_ra>
